<compile_context>
chip_gen: v6e
topology: v6e:2x2x1
jax: 0.10.0
libtpu: 0.0.40
codegen_flags: <defaults>
</compile_context>

<pallas_src>
import jax
import jax.numpy as jnp
from jax.experimental import pallas as pl
from jax.experimental.pallas import tpu as pltpu


def _round_up(n, m):
    return ((n + m - 1) // m) * m


def mlp_kernel(x_ref, w1_ref, b1_ref, w2_ref, b2_ref, w3_ref, b3_ref, o_ref):
    # x arrives as f32 straight from HBM; cast to bf16 here (VPU work that is
    # hidden under the MXU / input DMA) -> halves activation HBM traffic.
    xb = x_ref[...].astype(jnp.bfloat16)
    # fc1 + ReLU  (bf16 operands, f32 accumulate)
    h1 = jnp.dot(xb, w1_ref[...], preferred_element_type=jnp.float32)
    h1 = jnp.maximum(h1 + b1_ref[...], 0.0)
    # TODO(synk): nn.Dropout(0.25) is identity in eval/inference mode; omitted.
    # fc2 + ReLU (hidden_2 zero-padded 64->128 lanes)
    h2 = jnp.dot(h1.astype(w2_ref.dtype), w2_ref[...],
                 preferred_element_type=jnp.float32)
    h2 = jnp.maximum(h2 + b2_ref[...], 0.0)
    # fc3 logits (output zero-padded 10->128 lanes -> unmasked lane-dense store)
    out = jnp.dot(h2.astype(w3_ref.dtype), w3_ref[...],
                  preferred_element_type=jnp.float32)
    o_ref[...] = (out + b3_ref[...]).astype(o_ref.dtype)


def mlp_forward(x_nchw, params):
    """x_nchw: (B, 1, 28, 28) float32.  Returns (B, 10) float32 logits."""
    w1, b1, w2, b2, w3, b3 = params
    B = x_nchw.shape[0]
    D_IN, H1 = w1.shape          # 784, 256
    H2 = w2.shape[1]             # 64
    N_OUT = w3.shape[1]          # 10
    H2P = _round_up(H2, 128)     # 128
    NOP = _round_up(N_OUT, 128)  # 128

    # Flatten like torch's x.view(B, -1).  No dtype cast and no batch pad in
    # HBM: the kernel reads f32 directly and the grid handles a ragged tail
    # via a partial last block (those rows are sliced off below).
    x2d = x_nchw.reshape(B, -1)

    # Batch tile selection:
    #  - big tiles amortize per-step overhead and lengthen DMA bursts;
    #  - >=2 grid steps (for B>=32) so dimension_semantics=("parallel",) can
    #    actually split the batch across v7x's two TensorCores;
    #  - cap at 1024 rows: double-buffered f32 x tile (~6.4 MiB) + resident
    #    weights + intermediates stay well inside v7x's 64 MiB VMEM.
    if B >= 32:
        TB = min(1024, _round_up(pl.cdiv(B, 2), 16))
    else:
        TB = _round_up(max(B, 1), 16)
    grid = (pl.cdiv(B, TB),)

    # Zero-pad the narrow feature dims to 128 lanes (exact: ReLU(0)=0 and the
    # padded logit columns are sliced off).
    w2p = jnp.pad(w2, ((0, 0), (0, H2P - H2)))
    b2p = jnp.pad(b2, ((0, 0), (0, H2P - H2)))
    w3p = jnp.pad(w3, ((0, H2P - H2), (0, NOP - N_OUT)))
    b3p = jnp.pad(b3, ((0, 0), (0, NOP - N_OUT)))

    w1b = w1.astype(jnp.bfloat16)
    w2b = w2p.astype(jnp.bfloat16)
    w3b = w3p.astype(jnp.bfloat16)
    b1f = b1.astype(jnp.float32)
    b2f = b2p.astype(jnp.float32)
    b3f = b3p.astype(jnp.float32)

    # Constant block index across the (only) grid axis -> stays VMEM-resident.
    resident = lambda shape: pl.BlockSpec(shape, lambda i: (0,) * len(shape))

    flops = 2 * B * (D_IN * H1 + H1 * H2P + H2P * NOP)
    bytes_accessed = (
        B * D_IN * 4                                   # f32 x, read once in-kernel
        + (w1b.size + w2b.size + w3b.size) * 2         # bf16 weights
        + (b1f.size + b2f.size + b3f.size) * 4         # f32 biases
        + B * NOP * 4)                                 # f32 padded logits

    out = pl.pallas_call(
        mlp_kernel,
        out_shape=jax.ShapeDtypeStruct((B, NOP), jnp.float32),
        grid_spec=pltpu.PrefetchScalarGridSpec(
            num_scalar_prefetch=0,
            grid=grid,
            in_specs=[
                pl.BlockSpec((TB, D_IN), lambda i: (i, 0)),   # batch-tiled f32 x
                resident(w1b.shape), resident(b1f.shape),
                resident(w2b.shape), resident(b2f.shape),
                resident(w3b.shape), resident(b3f.shape),
            ],
            out_specs=pl.BlockSpec((TB, NOP), lambda i: (i, 0)),
        ),
        compiler_params=pltpu.CompilerParams(
            dimension_semantics=("parallel",)),   # megacore-shardable on v7x
        cost_estimate=pl.CostEstimate(
            flops=flops, transcendentals=0, bytes_accessed=bytes_accessed),
    )(x2d, w1b, b1f, w2b, b2f, w3b, b3f)

    return out[:B, :N_OUT]


def init_params(key, hidden_1=256, hidden_2=64):
    """Deterministic init mimicking nn.Linear default (uniform +/- 1/sqrt(fan_in)).
    Weights stored transposed as (in_features, out_features) so kernel does x @ W + b."""
    ks = jax.random.split(key, 6)

    def linear(kw, kb, fan_in, fan_out):
        bound = 1.0 / jnp.sqrt(fan_in)
        w = jax.random.uniform(kw, (fan_in, fan_out), jnp.float32, -bound, bound)
        b = jax.random.uniform(kb, (1, fan_out), jnp.float32, -bound, bound)
        return w, b

    w1, b1 = linear(ks[0], ks[1], 28 * 28, hidden_1)
    w2, b2 = linear(ks[2], ks[3], hidden_1, hidden_2)
    w3, b3 = linear(ks[4], ks[5], hidden_2, 10)
    return (w1, b1, w2, b2, w3, b3)


def reference_forward(x_nchw, params):
    """Pure-JAX reference replicating the kernel's bf16-operand / f32-accumulate math."""
    w1, b1, w2, b2, w3, b3 = params
    bf = lambda a: a.astype(jnp.bfloat16).astype(jnp.float32)
    x = bf(x_nchw.reshape(x_nchw.shape[0], -1))
    h1 = jnp.maximum(x @ bf(w1) + b1, 0.0)
    h2 = jnp.maximum(bf(h1) @ bf(w2) + b2, 0.0)
    return bf(h2) @ bf(w3) + b3


if __name__ == "__main__":
    key = jax.random.PRNGKey(0)
    k_x, k_p = jax.random.split(key)
    # Small batch of MNIST-shaped inputs (NCHW), as the module's forward implies.
    x = jax.random.normal(k_x, (2, 1, 28, 28), dtype=jnp.float32)
    params = init_params(k_p)

    out = jax.block_until_ready(mlp_forward(x, params))
    ref = reference_forward(x, params)

    assert out.shape == (2, 10)
    assert jnp.allclose(out, ref, atol=1e-3, rtol=1e-3), "mismatch vs reference"
    print("KERNEL_OK")
</pallas_src>

<mosaic_0001>
module attributes {stable_mosaic.version = 11 : i64} {
  func.func @mlp_kernel(%arg0: i32, %arg1: memref<16x784xf32, #tpu.memory_space<vmem>>, %arg2: memref<784x256xbf16, #tpu.memory_space<vmem>>, %arg3: memref<1x256xf32, #tpu.memory_space<vmem>>, %arg4: memref<256x128xbf16, #tpu.memory_space<vmem>>, %arg5: memref<1x128xf32, #tpu.memory_space<vmem>>, %arg6: memref<128x128xbf16, #tpu.memory_space<vmem>>, %arg7: memref<1x128xf32, #tpu.memory_space<vmem>>, %arg8: memref<16x128xf32, #tpu.memory_space<vmem>>) attributes {dimension_semantics = [#tpu.dimension_semantics<parallel>], iteration_bounds = array<i64: 1>, scalar_prefetch = 0 : i64, scratch_operands = 0 : i64, tpu.core_type = #tpu.core_type<tc>, window_params = [{transform_indices = @transform_0, window_bounds = array<i64: 16, 784>}, {pipeline_mode = #tpu.pipeline_mode<synchronous>, transform_indices = @transform_1, window_bounds = array<i64: 784, 256>}, {pipeline_mode = #tpu.pipeline_mode<synchronous>, transform_indices = @transform_2, window_bounds = array<i64: 1, 256>}, {pipeline_mode = #tpu.pipeline_mode<synchronous>, transform_indices = @transform_3, window_bounds = array<i64: 256, 128>}, {pipeline_mode = #tpu.pipeline_mode<synchronous>, transform_indices = @transform_4, window_bounds = array<i64: 1, 128>}, {pipeline_mode = #tpu.pipeline_mode<synchronous>, transform_indices = @transform_5, window_bounds = array<i64: 128, 128>}, {pipeline_mode = #tpu.pipeline_mode<synchronous>, transform_indices = @transform_6, window_bounds = array<i64: 1, 128>}, {transform_indices = @transform_7, window_bounds = array<i64: 16, 128>}]} {
    %c0 = arith.constant 0 : index
    %c0_0 = arith.constant 0 : index
    %0 = vector.load %arg1[%c0, %c0_0] : memref<16x784xf32, #tpu.memory_space<vmem>>, vector<16x784xf32>
    %1 = arith.truncf %0 : vector<16x784xf32> to vector<16x784xbf16>
    %c0_1 = arith.constant 0 : index
    %c0_2 = arith.constant 0 : index
    %2 = vector.load %arg2[%c0_1, %c0_2] : memref<784x256xbf16, #tpu.memory_space<vmem>>, vector<784x256xbf16>
    %cst = arith.constant dense<0.000000e+00> : vector<16x256xf32>
    %3 = tpu.matmul %1, %2, %cst {dimension_numbers = #tpu.dot_dimension_numbers<[1], [0], [0], [1], [0, 0, 1, 1], [], []>} : vector<16x784xbf16>, vector<784x256xbf16>, vector<16x256xf32> -> vector<16x256xf32>
    %c0_3 = arith.constant 0 : index
    %c0_4 = arith.constant 0 : index
    %4 = vector.load %arg3[%c0_3, %c0_4] : memref<1x256xf32, #tpu.memory_space<vmem>>, vector<1x256xf32>
    %5 = vector.broadcast %4 : vector<1x256xf32> to vector<16x256xf32>
    %6 = arith.addf %3, %5 : vector<16x256xf32>
    %cst_5 = arith.constant 0.000000e+00 : f32
    %7 = vector.broadcast %cst_5 : f32 to vector<16x256xf32>
    %8 = arith.maximumf %6, %7 : vector<16x256xf32>
    %9 = arith.truncf %8 : vector<16x256xf32> to vector<16x256xbf16>
    %c0_6 = arith.constant 0 : index
    %c0_7 = arith.constant 0 : index
    %10 = vector.load %arg4[%c0_6, %c0_7] : memref<256x128xbf16, #tpu.memory_space<vmem>>, vector<256x128xbf16>
    %cst_8 = arith.constant dense<0.000000e+00> : vector<16x128xf32>
    %11 = tpu.matmul %9, %10, %cst_8 {dimension_numbers = #tpu.dot_dimension_numbers<[1], [0], [0], [1], [0, 0, 1, 1], [], []>} : vector<16x256xbf16>, vector<256x128xbf16>, vector<16x128xf32> -> vector<16x128xf32>
    %c0_9 = arith.constant 0 : index
    %c0_10 = arith.constant 0 : index
    %12 = vector.load %arg5[%c0_9, %c0_10] : memref<1x128xf32, #tpu.memory_space<vmem>>, vector<1x128xf32>
    %13 = vector.broadcast %12 : vector<1x128xf32> to vector<16x128xf32>
    %14 = arith.addf %11, %13 : vector<16x128xf32>
    %cst_11 = arith.constant 0.000000e+00 : f32
    %15 = vector.broadcast %cst_11 : f32 to vector<16x128xf32>
    %16 = arith.maximumf %14, %15 : vector<16x128xf32>
    %17 = arith.truncf %16 : vector<16x128xf32> to vector<16x128xbf16>
    %c0_12 = arith.constant 0 : index
    %c0_13 = arith.constant 0 : index
    %18 = vector.load %arg6[%c0_12, %c0_13] : memref<128x128xbf16, #tpu.memory_space<vmem>>, vector<128x128xbf16>
    %cst_14 = arith.constant dense<0.000000e+00> : vector<16x128xf32>
    %19 = tpu.matmul %17, %18, %cst_14 {dimension_numbers = #tpu.dot_dimension_numbers<[1], [0], [0], [1], [0, 0, 1, 1], [], []>} : vector<16x128xbf16>, vector<128x128xbf16>, vector<16x128xf32> -> vector<16x128xf32>
    %c0_15 = arith.constant 0 : index
    %c0_16 = arith.constant 0 : index
    %20 = vector.load %arg7[%c0_15, %c0_16] : memref<1x128xf32, #tpu.memory_space<vmem>>, vector<1x128xf32>
    %21 = vector.broadcast %20 : vector<1x128xf32> to vector<16x128xf32>
    %22 = arith.addf %19, %21 : vector<16x128xf32>
    %c0_17 = arith.constant 0 : index
    %c0_18 = arith.constant 0 : index
    %23 = vector.load %arg8[%c0_17, %c0_18] : memref<16x128xf32, #tpu.memory_space<vmem>>, vector<16x128xf32>
    tpu.vector_store %arg8[%c0_17, %c0_18], %22 {strides = array<i32>} : memref<16x128xf32, #tpu.memory_space<vmem>>, vector<16x128xf32>,
    return
  }
  func.func @transform_0(%arg0: i32) -> (i32, i32) {
    %c0_i32 = arith.constant 0 : i32
    %c0_i32_0 = arith.constant 0 : i32
    return %arg0, %c0_i32 : i32, i32
  }
  func.func @transform_1(%arg0: i32) -> (i32, i32) {
    %c0_i32 = arith.constant 0 : i32
    %c0_i32_0 = arith.constant 0 : i32
    %c0_i32_1 = arith.constant 0 : i32
    return %c0_i32, %c0_i32_0 : i32, i32
  }
  func.func @transform_2(%arg0: i32) -> (i32, i32) {
    %c0_i32 = arith.constant 0 : i32
    %c0_i32_0 = arith.constant 0 : i32
    %c0_i32_1 = arith.constant 0 : i32
    return %c0_i32, %c0_i32_0 : i32, i32
  }
  func.func @transform_3(%arg0: i32) -> (i32, i32) {
    %c0_i32 = arith.constant 0 : i32
    %c0_i32_0 = arith.constant 0 : i32
    %c0_i32_1 = arith.constant 0 : i32
    return %c0_i32, %c0_i32_0 : i32, i32
  }
  func.func @transform_4(%arg0: i32) -> (i32, i32) {
    %c0_i32 = arith.constant 0 : i32
    %c0_i32_0 = arith.constant 0 : i32
    %c0_i32_1 = arith.constant 0 : i32
    return %c0_i32, %c0_i32_0 : i32, i32
  }
  func.func @transform_5(%arg0: i32) -> (i32, i32) {
    %c0_i32 = arith.constant 0 : i32
    %c0_i32_0 = arith.constant 0 : i32
    %c0_i32_1 = arith.constant 0 : i32
    return %c0_i32, %c0_i32_0 : i32, i32
  }
  func.func @transform_6(%arg0: i32) -> (i32, i32) {
    %c0_i32 = arith.constant 0 : i32
    %c0_i32_0 = arith.constant 0 : i32
    %c0_i32_1 = arith.constant 0 : i32
    return %c0_i32, %c0_i32_0 : i32, i32
  }
  func.func @transform_7(%arg0: i32) -> (i32, i32) {
    %c0_i32 = arith.constant 0 : i32
    %c0_i32_0 = arith.constant 0 : i32
    return %arg0, %c0_i32 : i32, i32
  }
}

</mosaic_0001>

<bundles_post_ra>
// kernel: tpu_custom_call.1
= control target key start
LH: loop header
LB: loop body
LE: loop exit
PB: predicated region body
PF: predicated region fallthrough
CT: control target
= control target key end

     0   :  { %12 = vsyncpa [#allocation3], 0  ;;  %s1982_s0 = inlined_call_operand.hbm [shape: f32[2,784], index: 0, kind: input, shape index: {}]   ;;  %s1983_s1 = inlined_call_operand.hbm [shape: bf16[784,256], index: 1, kind: input, shape index: {}]   ;;  %s1984_s2 = inlined_call_operand.vmem [shape: f32[1,256], index: 2, kind: input, shape index: {}]   ;;  %s1985_s3 = inlined_call_operand.hbm [shape: bf16[256,128], index: 3, kind: input, shape index: {}]   ;;  %s1986_s4 = inlined_call_operand.vmem [shape: f32[1,128], index: 4, kind: input, shape index: {}]   ;;  %s1987_s5 = inlined_call_operand.hbm [shape: bf16[128,128], index: 5, kind: input, shape index: {}]   ;;  %s1988_s6 = inlined_call_operand.vmem [shape: f32[1,128], index: 6, kind: input, shape index: {}]   ;;  %s1989_s7 = inlined_call_operand.hbm [shape: f32[2,128], index: 7, kind: output, shape index: {}]  }
   0x1   :  { %13 = vsyncpa [#allocation6], 0 }
   0x2   :  { %14 = vsyncpa [#allocation9], 0 }
   0x3   :  { %15 = vsyncpa [#allocation4], 0 }
   0x4   :  { %20 = vsyncadd [#allocation3], 1568  ;;  %s1868_s24 = smov [#allocation5]  }
   0x5   :  { %s33_s25 = sshll.u32 %s1868_s24, 4  ;;  %s34_s25 = int_to_ptr.vmem [resolvable:$true] %s33_s25 }
   0x6   :  { %s1768_s26 = scalar_lea.vmem %s34_s25, 12544  ;;  %p1773_p1 = scmp.lt.s32.totalorder %s34_s25, %s34_s25 }
   0x7   :  { %p1769_p0 = scmp.ne.s32.totalorder %s34_s25, %s1768_s26  ;;  %p1774_p2 = scmp.lt.s32.totalorder %s1768_s26, %s1768_s26 }
   0x9   :  { %p1775_p3 = por %p1774_p2, %p1773_p1 }
   0xb   :  { %p1776_p4 = pnand %p1775_p3, %p1769_p0 }
   0xd   :  { %1779 = shalt.err (!%p1776_p4)
}
   0xe   :  { %s1869_s27 = smov 128   ;;  %s1870_s28 = smov 8  }
   0xf   :  { %39 = dma.hbm_to_vmem [thread:$0]  %s1983_s1, 12544, %s34_s25, [#allocation6], %s1869_s27, %s1869_s27, %s1870_s28  }
  0x10   :  { %s1871_s8 = smov [#allocation2]  }
  0x11   :  { %s21_s9 = sshll.u32 %s1871_s8, 4  ;;  %s22_s9 = int_to_ptr.vmem [resolvable:$true] %s21_s9 }
  0x12   :  { %s1788_s10 = scalar_lea.vmem %s22_s9, 224  ;;  %s1792_s11 = scalar_lea.vmem %s22_s9, 1792 }
  0x13   :  { %p1789_p5 = scmp.ne.s32.totalorder %s22_s9, %s1788_s10  ;;  %p1793_p6 = scmp.lt.s32.totalorder %s22_s9, %s22_s9 }
  0x14   :  { %p1794_p7 = scmp.lt.s32.totalorder %s1792_s11, %s1788_s10 }
  0x16   :  { %p1795_p8 = por %p1794_p7, %p1793_p6 }
  0x18   :  { %p1796_p9 = pnand %p1795_p8, %p1789_p5 }
  0x1a   :  { %1799 = shalt.err (!%p1796_p9)
}
  0x1b   :  { %s1872_s12 = smov 224   ;;  %s1873_s13 = smov 14  }
  0x1c   :  { %27 = dma.hbm_to_vmem [thread:$0]  %s1982_s0, 224, %s22_s9, [#allocation3], %s1872_s12, %s1872_s12, %s1873_s13  }
  0x1d   :  { %s1874_s16 = smov [#allocation7]  }
  0x1e   :  { %s47_s17 = sshll.u32 %s1874_s16, 4  ;;  %s48_s17 = int_to_ptr.vmem [resolvable:$true] %s47_s17 }
  0x1f   :  { %s1808_s1 = scalar_lea.vmem %s48_s17, 2048  ;;  %p1813_p11 = scmp.lt.s32.totalorder %s48_s17, %s48_s17 }
  0x20   :  { %p1809_p10 = scmp.ne.s32.totalorder %s48_s17, %s1808_s1  ;;  %p1814_p12 = scmp.lt.s32.totalorder %s1808_s1, %s1808_s1 }
  0x22   :  { %p1815_p13 = por %p1814_p12, %p1813_p11 }
  0x24   :  { %p1816_p0 = pnand %p1815_p13, %p1809_p10 }
  0x26   :  { %1819 = shalt.err (!%p1816_p0)
}
  0x27   :  { %s1875_s18 = smov 64   ;;  %s1876_s19 = smov 4  }
  0x28   :  { %53 = dma.hbm_to_vmem [thread:$0]  %s1985_s3, 2048, %s48_s17, [#allocation6], %s1875_s18, %s1875_s18, %s1876_s19  }
  0x29   :  { %s1877_s22 = smov [#allocation8]  }
  0x2a   :  { %s61_s23 = sshll.u32 %s1877_s22, 4  ;;  %s62_s23 = int_to_ptr.vmem [resolvable:$true] %s61_s23 }
  0x2b   :  { %s1828_s0 = scalar_lea.vmem %s62_s23, 1024  ;;  %p1833_p2 = scmp.lt.s32.totalorder %s62_s23, %s62_s23 }
  0x2c   :  { %p1829_p1 = scmp.ne.s32.totalorder %s62_s23, %s1828_s0  ;;  %p1834_p3 = scmp.lt.s32.totalorder %s1828_s0, %s1828_s0 }
  0x2e   :  { %p1835_p4 = por %p1834_p3, %p1833_p2 }
  0x30   :  { %p1836_p5 = pnand %p1835_p4, %p1829_p1 }
  0x32   :  { %1839 = shalt.err (!%p1836_p5)
}
  0x33   :  { %67 = dma.hbm_to_vmem [thread:$0]  %s1987_s5, 1024, %s62_s23, [#allocation9], %s1875_s18, %s1875_s18, %s1876_s19  }
  0x34   :  { %1860 = dma.done.wait [#allocation3], 1792  }
  0x35   :  { %1861 = vsyncadd [#allocation3], 4294965504 }
  0x36   :  { %1862 = dma.done.wait [#allocation6], 14592  }
  0x37   :  { %1863 = vsyncadd [#allocation6], 4294952704 }
  0x38   :  { %1864 = dma.done.wait [#allocation9], 1024  }
  0x39   :  { %1865 = vsyncadd [#allocation9], 4294966272  ;;  %v1565_v0 = vld [vmem:[#allocation5 + $0x74] ss:$8 sps:$4 sm:$0xff]   ;;  %v1567_v1 = vld [vmem:[#allocation5 + $0x70] ss:$8 sps:$4 sm:$0xff]   ;;  %v122_v41 = vlaneseq }
  0x3a   :  { %882 = vmatprep.subr.bf16.mxu0 %v1565_v0  ;;  %v1568_v2 = vld [vmem:[#allocation5 + $0x174] ss:$8 sps:$4 sm:$0xff]   ;;  %v1570_v3 = vld [vmem:[#allocation5 + $0x170] ss:$8 sps:$4 sm:$0xff]   ;;  %v1571_v4 = vld [vmem:[#allocation5 + $0x64] ss:$8 sps:$4 sm:$0xff]  }
  0x3b   :  { %883 = vmatpush1.bf16.msra.mxu0 %v1567_v1  ;;  %v1573_v5 = vld [vmem:[#allocation5 + $0x60] ss:$8 sps:$4 sm:$0xff]   ;;  %925 = vmatprep.subr.bf16.mxu1 %v1568_v2  ;;  %v1574_v6 = vld [vmem:[#allocation5 + $0x164] ss:$8 sps:$4 sm:$0xff]   ;;  %v1577_v8 = vld [vmem:[#allocation5 + $0x54] ss:$8 sps:$4 sm:$0xff]  }
  0x3c   :  { %926 = vmatpush1.bf16.msra.mxu1 %v1570_v3  ;;  %884 = vmatprep.subr.bf16.mxu0 %v1571_v4  ;;  %v1576_v7 = vld [vmem:[#allocation5 + $0x160] ss:$8 sps:$4 sm:$0xff]   ;;  %v1579_v9 = vld [vmem:[#allocation5 + $0x50] ss:$8 sps:$4 sm:$0xff]   ;;  %v1580_v10 = vld [vmem:[#allocation5 + $0x154] ss:$8 sps:$4 sm:$0xff]  }
  0x3d   :  { %927 = vmatprep.subr.bf16.mxu1 %v1574_v6  ;;  %v1583_v11 = vld [vmem:[#allocation5 + $0x44] ss:$8 sps:$4 sm:$0xff]   ;;  %v1582_v12 = vld [vmem:[#allocation5 + $0x150] ss:$8 sps:$4 sm:$0xff]   ;;  %v1585_v14 = vld [vmem:[#allocation5 + $0x40] ss:$8 sps:$4 sm:$0xff]  }
  0x3e   :  { %v1586_v13 = vld [vmem:[#allocation5 + $0x144] ss:$8 sps:$4 sm:$0xff]   ;;  %v1589_v15 = vld [vmem:[#allocation5 + $0x34] ss:$8 sps:$4 sm:$0xff]   ;;  %v1588_v16 = vld [vmem:[#allocation5 + $0x140] ss:$8 sps:$4 sm:$0xff]  }
  0x3f   :  { %885 = vmatpush1.bf16.msra.mxu0 %v1573_v5  ;;  %v1592_v17 = vld [vmem:[#allocation5 + $0x134] ss:$8 sps:$4 sm:$0xff]   ;;  %v1591_v18 = vld [vmem:[#allocation5 + $0x30] ss:$8 sps:$4 sm:$0xff]   ;;  %v1595_v19 = vld [vmem:[#allocation5 + $0x24] ss:$8 sps:$4 sm:$0xff]  }
  0x40   :  { %886 = vmatprep.subr.bf16.mxu0 %v1577_v8  ;;  %928 = vmatpush1.bf16.msra.mxu1 %v1576_v7  ;;  %v1594_v20 = vld [vmem:[#allocation5 + $0x130] ss:$8 sps:$4 sm:$0xff]   ;;  %v1598_v21 = vld [vmem:[#allocation5 + $0x124] ss:$8 sps:$4 sm:$0xff]   ;;  %v1597_v22 = vld [vmem:[#allocation5 + $0x20] ss:$8 sps:$4 sm:$0xff]  }
  0x41   :  { %929 = vmatprep.subr.bf16.mxu1 %v1580_v10  ;;  %v1601_v23 = vld [vmem:[#allocation5 + $0x14] ss:$8 sps:$4 sm:$0xff]   ;;  %v1600_v24 = vld [vmem:[#allocation5 + $0x120] ss:$8 sps:$4 sm:$0xff]   ;;  %v1603_v26 = vld [vmem:[#allocation5 + $0x10] ss:$8 sps:$4 sm:$0xff]  }
  0x42   :  { %v1604_v25 = vld [vmem:[#allocation5 + $0x114] ss:$8 sps:$4 sm:$0xff]   ;;  %v1607_v27 = vld [vmem:[#allocation5 + $0x4] ss:$8 sps:$4 sm:$0xff]   ;;  %v1606_v28 = vld [vmem:[#allocation5 + $0x110] ss:$8 sps:$4 sm:$0xff]  }
  0x43   :  { %887 = vmatpush1.bf16.msra.mxu0 %v1579_v9  ;;  %v1610_v29 = vld [vmem:[#allocation5 + $0x104] ss:$8 sps:$4 sm:$0xff]   ;;  %v1609_v30 = vld [vmem:[#allocation5] ss:$8 sps:$4 sm:$0xff]   ;;  %v1613_v31 = vld [vmem:[#allocation5 + $0xf4] ss:$8 sps:$4 sm:$0xff]  }
  0x44   :  { %888 = vmatprep.subr.bf16.mxu0 %v1583_v11  ;;  %930 = vmatpush1.bf16.msra.mxu1 %v1582_v12  ;;  %v1612_v32 = vld [vmem:[#allocation5 + $0x100] ss:$8 sps:$4 sm:$0xff]   ;;  %v1616_v33 = vld [vmem:[#allocation5 + $0x1f4] ss:$8 sps:$4 sm:$0xff]   ;;  %v1615_v34 = vld [vmem:[#allocation5 + $0xf0] ss:$8 sps:$4 sm:$0xff]  }
  0x45   :  { %931 = vmatprep.subr.bf16.mxu1 %v1586_v13  ;;  %v1619_v35 = vld [vmem:[#allocation5 + $0xe4] ss:$8 sps:$4 sm:$0xff]   ;;  %v1618_v36 = vld [vmem:[#allocation5 + $0x1f0] ss:$8 sps:$4 sm:$0xff]   ;;  %v1621_v38 = vld [vmem:[#allocation5 + $0xe0] ss:$8 sps:$4 sm:$0xff]  }
  0x46   :  { %v1622_v37 = vld [vmem:[#allocation5 + $0x1e4] ss:$8 sps:$4 sm:$0xff]   ;;  %v1878_v39 = vmov 1983009808   ;;  %v1625_v42 = vld [vmem:[#allocation5 + $0xd4] ss:$8 sps:$4 sm:$0xff]  }
  0x47   :  { %889 = vmatpush1.bf16.msra.mxu0 %v1585_v14  ;;  %v120_v40 = vunpack.c.l.s4 %v1878_v39  ;;  %v1624_v43 = vld [vmem:[#allocation5 + $0x1e0] ss:$8 sps:$4 sm:$0xff]   ;;  %v1628_v44 = vld [vmem:[#allocation5 + $0x1d4] ss:$8 sps:$4 sm:$0xff]   ;;  %v1627_v45 = vld [vmem:[#allocation5 + $0xd0] ss:$8 sps:$4 sm:$0xff]  }
  0x48   :  { %890 = vmatprep.subr.bf16.mxu0 %v1589_v15  ;;  %932 = vmatpush1.bf16.msra.mxu1 %v1588_v16  ;;  %v1630_v46 = vld [vmem:[#allocation5 + $0x1d0] ss:$8 sps:$4 sm:$0xff]   ;;  %v1937_v48 = vshrl.u32 %v122_v41, 7  ;;  %v1631_v49 = vld [vmem:[#allocation5 + $0xc4] ss:$8 sps:$4 sm:$0xff]   ;;  %v1879_v41 = vmov 0  }
  0x49   :  { %933 = vmatprep.subr.bf16.mxu1 %v1592_v17  ;;  %v121_v47 = vunpack.c.0.s8 %v120_v40  ;;  %v1633_v50 = vld [vmem:[#allocation5 + $0xc0] ss:$8 sps:$4 sm:$0xff]   ;;  %v1634_v51 = vld [vmem:[#allocation5 + $0x1c4] ss:$8 sps:$4 sm:$0xff]   ;;  %v1637_v52 = vld [vmem:[#allocation5 + $0xb4] ss:$8 sps:$4 sm:$0xff]  }
  0x4a   :  { %v1636_v53 = vld [vmem:[#allocation5 + $0x1c0] ss:$8 sps:$4 sm:$0xff]   ;;  %v1639_v55 = vld [vmem:[#allocation5 + $0xb0] ss:$8 sps:$4 sm:$0xff]   ;;  %v1640_v59 = vld [vmem:[#allocation5 + $0x1b4] ss:$8 sps:$4 sm:$0xff]  }
  0x4b   :  { %891 = vmatpush1.bf16.msra.mxu0 %v1591_v18  ;;  %v1940_v54 = vsub.s32 %v121_v47, %v1937_v48  ;;  %v1660_v56 = vld [vmem:[#allocation2] ss:$14 sps:$4 sm:$0xff]   ;;  %v1662_v57 = vld [vmem:[#allocation2 + $0x1c] ss:$14 sps:$4 sm:$0xff]   ;;  %v1664_v58 = vld [vmem:[#allocation2 + $0x38] ss:$14 sps:$4 sm:$0xff]  }
  0x4c   :  { %892 = vmatprep.subr.bf16.mxu0 %v1595_v19  ;;  %934 = vmatpush1.bf16.msra.mxu1 %v1594_v20  ;;  %v1666_v60 = vld [vmem:[#allocation2 + $0x54] ss:$14 sps:$4 sm:$0xff]   ;;  %v1674_v5 = vld [vmem:[#allocation2 + $0x3c] ss:$14 sps:$4 sm:$0xff]   ;;  %v1675_v7 = vld [vmem:[#allocation2 + $0x58] ss:$14 sps:$4 sm:$0xff]  }
  0x4d   :  { %935 = vmatprep.subr.bf16.mxu1 %v1598_v21  ;;  %v1642_v61 = vld [vmem:[#allocation5 + $0x1b0] ss:$8 sps:$4 sm:$0xff]   ;;  %v1643_v62 = vld [vmem:[#allocation5 + $0xa4] ss:$8 sps:$4 sm:$0xff]   ;;  %v125_v63 = vrot.slane %v1660_v56, %v1940_v54  ;;  %v139_v0 = vrot.slane %v1662_v57, %v1940_v54  ;;  %v196_v1 = vrot.slane %v1664_v58, %v1940_v54  ;;  %v210_v2 = vrot.slane %v1666_v60, %v1940_v54  ;;  %v1645_v12 = vld [vmem:[#allocation5 + $0xa0] ss:$8 sps:$4 sm:$0xff]  }
  0x4e   :  { %v1672_v3 = vld [vmem:[#allocation2 + $0x4] ss:$14 sps:$4 sm:$0xff]   ;;  %v1673_v4 = vld [vmem:[#allocation2 + $0x20] ss:$14 sps:$4 sm:$0xff]   ;;  %v203_v13 = vrot.slane %v1674_v5, %v1940_v54  ;;  %v217_v14 = vrot.slane %v1675_v7, %v1940_v54  ;;  %vm878_vm0 = vcmask 130048   ;;  %vm1881_vm1 = vmmov 0  }
  0x4f   :  { %893 = vmatpush1.bf16.msra.mxu0 %v1597_v22  ;;  %v148_v6 = vcombine.high %v125_v63, %v139_v0  ;;  %v1646_v8 = vld [vmem:[#allocation5 + $0x1a4] ss:$8 sps:$4 sm:$0xff]   ;;  %v219_v9 = vcombine.high %v196_v1, %v210_v2  ;;  %v132_v10 = vrot.slane %v1672_v3, %v1940_v54  ;;  %v146_v11 = vrot.slane %v1673_v4, %v1940_v54  ;;  %v1649_v15 = vld [vmem:[#allocation5 + $0x94] ss:$8 sps:$4 sm:$0xff]   ;;  %v1648_v18 = vld [vmem:[#allocation5 + $0x1a0] ss:$8 sps:$4 sm:$0xff]  }
  0x50   :  { %894 = vmatprep.subr.bf16.mxu0 %v1601_v23  ;;  %936 = vmatpush1.bf16.msra.mxu1 %v1600_v24  ;;  %v221_v19 = vcombine.high %v203_v13, %v217_v14  ;;  %v1652_v20 = vld [vmem:[#allocation5 + $0x194] ss:$8 sps:$4 sm:$0xff]   ;;  %v1651_v21 = vld [vmem:[#allocation5 + $0x90] ss:$8 sps:$4 sm:$0xff]   ;;  %v1655_v23 = vld [vmem:[#allocation5 + $0x84] ss:$8 sps:$4 sm:$0xff]  }
  0x51   :  { %937 = vmatprep.subr.bf16.mxu1 %v1604_v25  ;;  %v272_v16 = vpack.c.bf16 %v219_v9, %v148_v6  ;;  %v150_v17 = vcombine.high %v132_v10, %v146_v11  ;;  %v1654_v24 = vld [vmem:[#allocation5 + $0x190] ss:$8 sps:$4 sm:$0xff]   ;;  %v1658_v25 = vld [vmem:[#allocation5 + $0x184] ss:$8 sps:$4 sm:$0xff]   ;;  %v1718_v39 = vld [vmem:[#allocation5 + $0x300] ss:$8 sps:$4 sm:$0xff]  }
  0x52   :  { %v1720_v40 = vld [vmem:[#allocation5 + $0x304] ss:$8 sps:$4 sm:$0xff]   ;;  %v1734_v57 = vld [vmem:[#allocation2 + $0x40] ss:$14 sps:$4 sm:$0xff]  }
  0x53   :  { %895 = vmatpush1.bf16.msra.mxu0 %v1603_v26  ;;  %914 = vmatprep.mubr.bf16.mxu0 %v272_v16  ;;  %v274_v22 = vpack.c.bf16 %v221_v19, %v150_v17  ;;  %v147_v26 = vcombine.low %v125_v63, %v139_v0  ;;  %v1726_v47 = vld [vmem:[#allocation2 + $0x28] ss:$14 sps:$4 sm:$0x33]   ;;  %v1733_v56 = vld [vmem:[#allocation2 + $0x24] ss:$14 sps:$4 sm:$0xff]  }
  0x54   :  { %896 = vmatprep.subr.bf16.mxu0 %v1607_v27  ;;  %938 = vmatpush1.bf16.msra.mxu1 %v1606_v28  ;;  %v218_v27 = vcombine.low %v196_v1, %v210_v2  ;;  %v1657_v28 = vld [vmem:[#allocation5 + $0x80] ss:$8 sps:$4 sm:$0xff]   ;;  %v1735_v58 = vld [vmem:[#allocation2 + $0x5c] ss:$14 sps:$4 sm:$0xff]   ;;  %v175_v0 = vrot.slane %v1733_v56, %v1940_v54  ;;  %v232_v1 = vrot.slane %v1734_v57, %v1940_v54 }
  0x55   :  { %939 = vmatprep.subr.bf16.mxu1 %v1610_v29  ;;  %957 = vmatprep.mubr.bf16.mxu1 %v274_v22  ;;  %v1671_v29 = vld [vmem:[#allocation5 + $0x274] ss:$8 sps:$4 sm:$0xff]   ;;  %v246_v2 = vrot.slane %v1735_v58, %v1940_v54  ;;  %v1688_v6 = vld [vmem:[#allocation5 + $0x220] ss:$8 sps:$4 sm:$0xff]   ;;  %v1703_v17 = vld [vmem:[#allocation5 + $0x2d0] ss:$8 sps:$4 sm:$0xff]  }
  0x56   :  { %v1705_v16 = vld [vmem:[#allocation5 + $0x2d4] ss:$8 sps:$4 sm:$0xff]   ;;  %v1706_v19 = vld [vmem:[#allocation5 + $0x2c0] ss:$8 sps:$4 sm:$0xff]   ;;  %v1714_v22 = vld [vmem:[#allocation5 + $0x2a4] ss:$8 sps:$4 sm:$0xff]  }
  0x57   :  { %897 = vmatpush1.bf16.msra.mxu0 %v1609_v30  ;;  %v149_v30 = vcombine.low %v132_v10, %v146_v11  ;;  %v255_v5 = vcombine.high %v232_v1, %v246_v2  ;;  %v1691_v10 = vld [vmem:[#allocation5 + $0x210] ss:$8 sps:$4 sm:$0xff]   ;;  %v1696_v11 = vld [vmem:[#allocation5 + $0x204] ss:$8 sps:$4 sm:$0xff]  }
  0x58   :  { %898 = vmatprep.subr.bf16.mxu0 %v1613_v31  ;;  %940 = vmatpush1.bf16.msra.mxu1 %v1612_v32  ;;  %v220_v31 = vcombine.low %v203_v13, %v217_v14  ;;  %v1668_v32 = vld [vmem:[#allocation5 + $0x180] ss:$8 sps:$4 sm:$0xff]   ;;  %v1697_v13 = vld [vmem:[#allocation5 + $0x2f0] ss:$8 sps:$4 sm:$0xff]   ;;  %v1702_v14 = vld [vmem:[#allocation5 + $0x2e4] ss:$8 sps:$4 sm:$0xff]  }
  0x59   :  { %941 = vmatprep.subr.bf16.mxu1 %v1616_v33  ;;  %v271_v33 = vpack.c.bf16 %v218_v27, %v147_v26  ;;  %v1723_v26 = vld [vmem:[#allocation5 + $0x284] ss:$8 sps:$4 sm:$0xff]  }
  0x5b   :  { %899 = vmatpush2.bf16.msra.mxu0 %v1615_v34  ;;  %v1669_v34 = vld [vmem:[#allocation5 + $0x270] ss:$8 sps:$4 sm:$0xff]  }
  0x5c   :  { %900 = vmatprep.subr.bf16.mxu0 %v1619_v35  ;;  %942 = vmatpush2.bf16.msra.mxu1 %v1618_v36  ;;  %v273_v35 = vpack.c.bf16 %v220_v31, %v149_v30  ;;  %v1678_v36 = vld [vmem:[#allocation5 + $0x264] ss:$8 sps:$4 sm:$0xff]  }
  0x5d   :  { %943 = vmatprep.subr.bf16.mxu1 %v1622_v37  ;;  %v1676_v37 = vld [vmem:[#allocation5 + $0x260] ss:$8 sps:$4 sm:$0xff]  }
  0x5e   :  { %v1736_v31 = vld [vmem:[#allocation7 + $0x78] sm:$0xff]  }
  0x5f   :  { %901 = vmatpush2.bf16.msra.mxu0 %v1621_v38  ;;  %v1681_v38 = vld [vmem:[#allocation5 + $0x254] ss:$8 sps:$4 sm:$0xff]  }
  0x60   :  { %902 = vmatprep.subr.bf16.mxu0 %v1625_v42  ;;  %944 = vmatpush2.bf16.msra.mxu1 %v1624_v43  ;;  %v1679_v42 = vld [vmem:[#allocation5 + $0x250] ss:$8 sps:$4 sm:$0xff]   ;;  %v1684_v43 = vld [vmem:[#allocation5 + $0x244] ss:$8 sps:$4 sm:$0xff]  }
  0x61   :  { %945 = vmatprep.subr.bf16.mxu1 %v1628_v44  ;;  %v1682_v44 = vld [vmem:[#allocation5 + $0x240] ss:$8 sps:$4 sm:$0xff]  }
  0x63   :  { %903 = vmatpush2.bf16.msra.mxu0 %v1627_v45  ;;  %v1724_v45 = vld [vmem:[#allocation2 + $0xc] ss:$14 sps:$4 sm:$0x33]  }
  0x64   :  { %904 = vmatprep.subr.bf16.mxu0 %v1631_v49  ;;  %946 = vmatpush2.bf16.msra.mxu1 %v1630_v46  ;;  %v1687_v46 = vld [vmem:[#allocation5 + $0x234] ss:$8 sps:$4 sm:$0xff]  }
  0x65   :  { %947 = vmatprep.subr.bf16.mxu1 %v1634_v51  ;;  %v1728_v49 = vld [vmem:[#allocation2 + $0x44] ss:$14 sps:$4 sm:$0x33]   ;;  %v1730_v51 = vld [vmem:[#allocation2 + $0x60] ss:$14 sps:$4 sm:$0x33]  }
  0x66   :  { %v253_v60 = vrot.slane %v1730_v51, %v1940_v54 }
  0x67   :  { %905 = vmatpush2.bf16.msra.mxu0 %v1633_v50  ;;  %v168_v50 = vrot.slane %v1724_v45, %v1940_v54  ;;  %v1750_v45 = vld [vmem:[#allocation7 + $0x40] sm:$0xff]  }
  0x68   :  { %906 = vmatprep.subr.bf16.mxu0 %v1637_v52  ;;  %948 = vmatpush2.bf16.msra.mxu1 %v1636_v53  ;;  %v1732_v52 = vld [vmem:[#allocation2 + $0x8] ss:$14 sps:$4 sm:$0xff]   ;;  %v182_v53 = vrot.slane %v1726_v47, %v1940_v54  ;;  %v1880_v47 = vmov 0.0  }
  0x69   :  { %949 = vmatprep.subr.bf16.mxu1 %v1640_v59  ;;  %v1685_v59 = vld [vmem:[#allocation5 + $0x230] ss:$8 sps:$4 sm:$0xff]  }
  0x6a   :  { %v185_v63 = vcombine.low %v168_v50, %v182_v53  ;;  %v376_v53 = vld [vmem:[%s1984_s2] sm:$0x3] }
  0x6b   :  { %907 = vmatpush2.bf16.msra.mxu0 %v1639_v55  ;;  %v239_v55 = vrot.slane %v1728_v49, %v1940_v54 }
  0x6c   :  { %908 = vmatprep.subr.bf16.mxu0 %v1643_v62  ;;  %950 = vmatpush2.bf16.msra.mxu1 %v1642_v61  ;;  %v161_v61 = vrot.slane %v1732_v52, %v1940_v54  ;;  %v1690_v62 = vld [vmem:[#allocation5 + $0x224] ss:$8 sps:$4 sm:$0xff]   ;;  %v1699_v54 = vld [vmem:[#allocation5 + $0x2f4] ss:$8 sps:$4 sm:$0xff]   ;;  %v384_v52 = vsub.s32 1, %v1937_v48 }
  0x6d   :  { %951 = vmatprep.subr.bf16.mxu1 %v1646_v8  ;;  %v256_v3 = vcombine.low %v239_v55, %v253_v60  ;;  %v1693_v8 = vld [vmem:[#allocation5 + $0x214] ss:$8 sps:$4 sm:$0xff]   ;;  %v380_v55 = vsub.s32 0, %v1937_v48 }
  0x6e   :  { %v184_v4 = vcombine.high %v161_v61, %v175_v0  ;;  %v183_v27 = vcombine.low %v161_v61, %v175_v0  ;;  %v385_v58 = vrot.slane %v376_v53, %v384_v52 }
  0x6f   :  { %909 = vmatpush2.bf16.msra.mxu0 %v1645_v12  ;;  %v277_v7 = vpack.c.bf16 %v256_v3, %v185_v63  ;;  %v1694_v12 = vld [vmem:[#allocation5 + $0x200] ss:$8 sps:$4 sm:$0xff]  }
  0x70   :  { %910 = vmatprep.subr.bf16.mxu0 %v1649_v15  ;;  %952 = vmatpush2.bf16.msra.mxu1 %v1648_v18  ;;  %v276_v9 = vpack.c.bf16 %v255_v5, %v184_v4  ;;  %v1700_v15 = vld [vmem:[#allocation5 + $0x2e0] ss:$8 sps:$4 sm:$0xff]   ;;  %v1708_v18 = vld [vmem:[#allocation5 + $0x2c4] ss:$8 sps:$4 sm:$0xff]  }
  0x71   :  { %953 = vmatprep.subr.bf16.mxu1 %v1652_v20  ;;  %v1711_v20 = vld [vmem:[#allocation5 + $0x2b4] ss:$8 sps:$4 sm:$0xff]  }
  0x73   :  { %911 = vmatpush2.bf16.msra.mxu0 %v1651_v21  ;;  %v1709_v21 = vld [vmem:[#allocation5 + $0x2b0] ss:$8 sps:$4 sm:$0xff]  }
  0x74   :  { %912 = vmatprep.subr.bf16.mxu0 %v1655_v23  ;;  %954 = vmatpush2.bf16.msra.mxu1 %v1654_v24  ;;  %v1712_v23 = vld [vmem:[#allocation5 + $0x2a0] ss:$8 sps:$4 sm:$0xff]   ;;  %v1717_v24 = vld [vmem:[#allocation5 + $0x294] ss:$8 sps:$4 sm:$0xff]  }
  0x75   :  { %955 = vmatprep.subr.bf16.mxu1 %v1658_v25  ;;  %v1715_v25 = vld [vmem:[#allocation5 + $0x290] ss:$8 sps:$4 sm:$0xff]  }
  0x77   :  { %913 = vmatpush2.bf16.msra.mxu0 %v1657_v28  ;;  %v254_v28 = vcombine.low %v232_v1, %v246_v2 }
  0x78   :  { %968 = vmatprep.subr.bf16.mxu0 %v1671_v29  ;;  %956 = vmatpush2.bf16.msra.mxu1 %v1668_v32  ;;  %v1721_v29 = vld [vmem:[#allocation5 + $0x280] ss:$8 sps:$4 sm:$0xff]  }
  0x79   :  { %1025 = vmatprep.subr.bf16.mxu1 %v1720_v40  ;;  %v275_v30 = vpack.c.bf16 %v254_v28, %v183_v27  ;;  %v1737_v32 = vld [vmem:[#allocation7 + $0x38] sm:$0xff]   ;;  %v1753_v28 = vld [vmem:[#allocation8 + $0x30] sm:$0xff]  }
  0x7a   :  { %915 = vmatmul.mubr.bf16.vlgmr.msra.gmra.mxu0 %v271_v33  ;;  %v1738_v33 = vld [vmem:[#allocation7 + $0x70] sm:$0xff]   ;;  %v1745_v40 = vld [vmem:[#allocation7 + $0x18] sm:$0xff]  }
  0x7b   :  { %969 = vmatpush1.bf16.msra.mxu0 %v1669_v34  ;;  %958 = vmatmul.mubr.bf16.vlgmr.msra.gmra.mxu1 %v273_v35  ;;  %v1739_v34 = vld [vmem:[#allocation7 + $0x30] sm:$0xff]   ;;  %v1740_v35 = vld [vmem:[#allocation7 + $0x68] sm:$0xff]  }
  0x7c   :  { %970 = vmatprep.subr.bf16.mxu0 %v1678_v36  ;;  %1043 = vmatprep.mubr.bf16.mxu1 %v1879_v41  ;;  %v1741_v36 = vld [vmem:[#allocation7 + $0x28] sm:$0xff]   ;;  %v1746_v41 = vld [vmem:[#allocation7 + $0x50] sm:$0xff]  }
  0x7d   :  { %1026 = vmatpush1.bf16.msra.mxu1 %v1718_v39  ;;  %1000 = vmatprep.mubr.bf16.mxu0 %v276_v9  ;;  %v1744_v39 = vld [vmem:[#allocation7 + $0x58] sm:$0xff]  }
  0x7e   :  { %1497 = vmatprep.subr.bf16.mxu1 %v1736_v31  ;;  %v1756_v31 = vld [vmem:[#allocation8 + $0x18] sm:$0xff]  }
  0x7f   :  { %971 = vmatpush1.bf16.msra.mxu0 %v1676_v37  ;;  %v1742_v37 = vld [vmem:[#allocation7 + $0x60] sm:$0xff]  }
  0x80   :  { %972 = vmatprep.subr.bf16.mxu0 %v1681_v38  ;;  %v1743_v38 = vld [vmem:[#allocation7 + $0x20] sm:$0xff]  }
  0x83   :  { %973 = vmatpush1.bf16.msra.mxu0 %v1679_v42  ;;  %1470 = vmatmul.mubr.msk.bf16.vlgmr.msra.gmra.mxu1 %vm878_vm0, %v277_v7  ;;  %v1747_v42 = vld [vmem:[#allocation7 + $0x10] sm:$0xff]  }
  0x84   :  { %974 = vmatprep.subr.bf16.mxu0 %v1684_v43  ;;  %1498 = vmatpush3.bf16.msra.mxu1 %v1737_v32  ;;  %v1748_v43 = vld [vmem:[#allocation7 + $0x48] sm:$0xff]   ;;  %v1757_v32 = vld [vmem:[#allocation8 + $0x10] sm:$0xff]  }
  0x85   :  { %1499 = vmatprep.subr.bf16.mxu1 %v1738_v33  ;;  %v1758_v33 = vld [vmem:[#allocation8 + $0x8] sm:$0xff]  }
  0x87   :  { %975 = vmatpush1.bf16.msra.mxu0 %v1682_v44  ;;  %v1749_v44 = vld [vmem:[#allocation7 + $0x8] sm:$0xff]  }
  0x88   :  { %976 = vmatprep.subr.bf16.mxu0 %v1687_v46  ;;  %1500 = vmatpush3.bf16.msra.mxu1 %v1739_v34  ;;  %v1751_v46 = vld [vmem:[#allocation7] sm:$0xff]  }
  0x89   :  { %1501 = vmatprep.subr.bf16.mxu1 %v1740_v35  ;;  %v1759_v34 = vld [vmem:[#allocation8] sm:$0xff]  }
  0x8b   :  { %977 = vmatpush1.bf16.msra.mxu0 %v1685_v59  ;;  %v381_v59 = vrot.slane %v376_v53, %v380_v55 }
  0x8c   :  { %978 = vmatprep.subr.bf16.mxu0 %v1690_v62  ;;  %1502 = vmatpush3.bf16.msra.mxu1 %v1741_v36 }
  0x8d   :  { %1503 = vmatprep.subr.bf16.mxu1 %v1742_v37 }
  0x8f   :  { %979 = vmatpush1.bf16.msra.mxu0 %v1688_v6 }
  0x90   :  { %980 = vmatprep.subr.bf16.mxu0 %v1693_v8  ;;  %1504 = vmatpush3.bf16.msra.mxu1 %v1743_v38  ;;  %v1471_v38 = vld [vmem:[%s1986_s4] ss:$0 sm:$0xff] }
  0x91   :  { %1505 = vmatprep.subr.bf16.mxu1 %v1744_v39 }
  0x93   :  { %981 = vmatpush1.bf16.msra.mxu0 %v1691_v10 }
  0x94   :  { %982 = vmatprep.subr.bf16.mxu0 %v1696_v11  ;;  %1506 = vmatpush3.bf16.msra.mxu1 %v1745_v40 }
  0x95   :  { %1507 = vmatprep.subr.bf16.mxu1 %v1746_v41 }
  0x97   :  { %983 = vmatpush1.bf16.msra.mxu0 %v1694_v12 }
  0x98   :  { %984 = vmatprep.subr.bf16.mxu0 %v1699_v54  ;;  %1508 = vmatpush3.bf16.msra.mxu1 %v1747_v42 }
  0x99   :  { %1509 = vmatprep.subr.bf16.mxu1 %v1748_v43 }
  0x9b   :  { %985 = vmatpush2.bf16.msra.mxu0 %v1697_v13 }
  0x9c   :  { %986 = vmatprep.subr.bf16.mxu0 %v1702_v14  ;;  %1510 = vmatpush3.bf16.msra.mxu1 %v1749_v44 }
  0x9d   :  { %1511 = vmatprep.subr.bf16.mxu1 %v1750_v45 }
  0x9f   :  { %987 = vmatpush2.bf16.msra.mxu0 %v1700_v15 }
  0xa0   :  { %988 = vmatprep.subr.bf16.mxu0 %v1705_v16  ;;  %1512 = vmatpush3.bf16.msra.mxu1 %v1751_v46 }
  0xa1   :  { %1528 = vmatprep.subr.bf16.mxu1 %v1880_v47 }
  0xa3   :  { %989 = vmatpush2.bf16.msra.mxu0 %v1703_v17 }
  0xa4   :  { %990 = vmatprep.subr.bf16.mxu0 %v1708_v18 }
  0xa7   :  { %991 = vmatpush2.bf16.msra.mxu0 %v1706_v19 }
  0xa8   :  { %992 = vmatprep.subr.bf16.mxu0 %v1711_v20 }
  0xab   :  { %993 = vmatpush2.bf16.msra.mxu0 %v1709_v21 }
  0xac   :  { %994 = vmatprep.subr.bf16.mxu0 %v1714_v22 }
  0xaf   :  { %995 = vmatpush2.bf16.msra.mxu0 %v1712_v23 }
  0xb0   :  { %996 = vmatprep.subr.bf16.mxu0 %v1717_v24 }
  0xb3   :  { %997 = vmatpush2.bf16.msra.mxu0 %v1715_v25 }
  0xb4   :  { %998 = vmatprep.subr.bf16.mxu0 %v1723_v26  ;;  %v1752_v26 = vld [vmem:[#allocation8 + $0x38] sm:$0xff]  }
  0xb7   :  { %999 = vmatpush2.bf16.msra.mxu0 %v1721_v29  ;;  %v1754_v29 = vld [vmem:[#allocation8 + $0x28] sm:$0xff]  }
  0xba   :  { %1001 = vmatmul.mubr.bf16.vlgmr.msra.gmra.mxu0 %v275_v30  ;;  %v1755_v30 = vld [vmem:[#allocation8 + $0x20] sm:$0xff]  }
 0x13a   :  { %v916_v50 = vpop.f32.mrf.mxu0 }
 0x13b   :  { %v959_v49 = vpop.f32.mrf.mxu1  ;;  %v917_v0 = vadd.f32 %v916_v50, %v381_v59 }
 0x13c   :  { %v918_v56 = vpop.f32.mrf.mxu0 }
 0x13d   :  { %v961_v51 = vpop.f32.mrf.mxu1  ;;  %v919_v63 = vadd.f32 %v918_v56, %v385_v58  ;;  %v960_v7 = vadd.f32 %v959_v49, %v917_v0 }
 0x13e   :  { %v920_v60 = vpop.f32.mrf.mxu0 }
 0x13f   :  { %v963_v57 = vpop.f32.mrf.mxu1  ;;  %v921_v2 = vadd.f32 %v920_v60, %v381_v59  ;;  %v962_v5 = vadd.f32 %v961_v51, %v919_v63 }
 0x140   :  { %v922_v1 = vpop.f32.mrf.mxu0 }
 0x141   :  { %v965_v61 = vpop.f32.mrf.mxu1  ;;  %v923_v6 = vadd.f32 %v922_v1, %v385_v58  ;;  %v964_v9 = vadd.f32 %v963_v57, %v921_v2 }
 0x143   :  { %v1045_v62 = vpop.f32.mrf.mxu1  ;;  %v966_v54 = vadd.f32 %v965_v61, %v923_v6 }
 0x145   :  { %v1047_v3 = vpop.f32.mrf.mxu1 }
 0x147   :  { %v1049_v11 = vpop.f32.mrf.mxu1 }
 0x149   :  { %v1051_v19 = vpop.f32.mrf.mxu1 }
 0x17a   :  { %v1002_v4 = vpop.f32.mrf.mxu0 }
 0x17b   :  { %v1003_v48 = vadd.f32 %v1002_v4, %v960_v7 }
 0x17c   :  { %v1004_v8 = vpop.f32.mrf.mxu0 }
 0x17d   :  { %v1005_v10 = vadd.f32 %v1004_v8, %v962_v5  ;;  %v1046_v18 = vadd.f32 %v1045_v62, %v1003_v48 }
 0x17e   :  { %v1006_v12 = vpop.f32.mrf.mxu0 }
 0x17f   :  { %v1007_v13 = vadd.f32 %v1006_v12, %v964_v9  ;;  %v1048_v15 = vadd.f32 %v1047_v3, %v1005_v10  ;;  %v1054_v24 = vmax.f32 %v1046_v18, 0.0 }
 0x180   :  { %v1008_v14 = vpop.f32.mrf.mxu0 }
 0x181   :  { %v1050_v16 = vadd.f32 %v1049_v11, %v1007_v13  ;;  %v1009_v17 = vadd.f32 %v1008_v14, %v966_v54  ;;  %v1055_v22 = vmax.f32 %v1048_v15, 0.0 }
 0x183   :  { %v1052_v20 = vadd.f32 %v1051_v19, %v1009_v17  ;;  %v1056_v21 = vmax.f32 %v1050_v16, 0.0 }
 0x185   :  { %v1057_v23 = vmax.f32 %v1052_v20, 0.0  ;;  %v1058_v27 = vpack.c.bf16 %v1056_v21, %v1054_v24 }
 0x187   :  { %v1059_v25 = vpack.c.bf16 %v1057_v23, %v1055_v22 }
 0x189   :  { %1227 = vmatprep.mubr.bf16.mxu1 %v1059_v25 }
 0x18a   :  { %1228 = vmatmul.mubr.bf16.vlgmr.msra.gmra.mxu1 %v1058_v27 }
 0x18b   :  { %1529 = vmatpush3.bf16.msra.mxu1 %v1752_v26  ;;  %1544 = vmatprep.mubr.msk.bf16.mxu1 %vm1881_vm1, %v1880_v47 }
 0x18c   :  { %1530 = vmatprep.subr.bf16.mxu1 %v1880_v47 }
 0x18f   :  { %1531 = vmatpush3.bf16.msra.mxu1 %v1753_v28 }
 0x190   :  { %1532 = vmatprep.subr.bf16.mxu1 %v1880_v47 }
 0x193   :  { %1533 = vmatpush3.bf16.msra.mxu1 %v1754_v29 }
 0x194   :  { %1534 = vmatprep.subr.bf16.mxu1 %v1880_v47 }
 0x197   :  { %1535 = vmatpush3.bf16.msra.mxu1 %v1755_v30 }
 0x198   :  { %1536 = vmatprep.subr.bf16.mxu1 %v1880_v47 }
 0x19b   :  { %1537 = vmatpush3.bf16.msra.mxu1 %v1756_v31 }
 0x19c   :  { %1538 = vmatprep.subr.bf16.mxu1 %v1880_v47 }
 0x19f   :  { %1539 = vmatpush3.bf16.msra.mxu1 %v1757_v32 }
 0x1a0   :  { %1540 = vmatprep.subr.bf16.mxu1 %v1880_v47 }
 0x1a3   :  { %1541 = vmatpush3.bf16.msra.mxu1 %v1758_v33 }
 0x1a4   :  { %1542 = vmatprep.subr.bf16.mxu1 %v1880_v47  ;;  %v1488_v47 = vld [vmem:[%s1988_s6] ss:$0 sm:$0xff] }
 0x1a7   :  { %1543 = vmatpush3.bf16.msra.mxu1 %v1759_v34 }
 0x24a   :  { %v1513_v35 = vpop.f32.mrf.mxu1 }
 0x24c   :  { %v1514_v36 = vpop.f32.mrf.mxu1 }
 0x24d   :  { %v1515_v37 = vadd.f32 %v1514_v36, %v1513_v35 }
 0x24e   :  { %v1516_v39 = vpop.f32.mrf.mxu1 }
 0x24f   :  { %v1230_v41 = vadd.f32 %v1515_v37, %v1471_v38 }
 0x250   :  { %v1517_v40 = vpop.f32.mrf.mxu1 }
 0x251   :  { %v1518_v42 = vadd.f32 %v1517_v40, %v1516_v39  ;;  %v1236_v44 = vmax.f32 %v1230_v41, 0.0 }
 0x253   :  { %v1233_v43 = vadd.f32 %v1518_v42, %v1471_v38 }
 0x255   :  { %v1237_v45 = vmax.f32 %v1233_v43, 0.0 }
 0x257   :  { %v1238_v46 = vpack.c.bf16 %v1237_v45, %v1236_v44 }
 0x259   :  { %1545 = vmatmul.mubr.bf16.vlgmr.msra.gmra.mxu1 %v1238_v46 }
 0x319   :  { %v1344_v49 = vpop.f32.mrf.mxu1 }
 0x31a   :  { %v1345_v50 = vadd.f32 %v1488_v47, %v1344_v49 }
 0x31b   :  { %v1546_v51 = vpop.f32.mrf.mxu1 }
 0x31c   :  { %1351 = vst [vmem:[#allocation10] sm:$0xff] %v1345_v50 }
 0x31d   :  { %v1347_v52 = vpop.f32.mrf.mxu1 }
 0x31e   :  { %v1348_v53 = vadd.f32 %v1488_v47, %v1347_v52 }
 0x31f   :  { %v1547_v55 = vpop.f32.mrf.mxu1 }
 0x320   :  { %1352 = vst [vmem:[#allocation10 + $0x8] sm:$0xff] %v1348_v53 }
 0x321   :  { %1357 = vsyncadd [#allocation4], 224  ;;  %s1882_s4 = smov [#allocation10]  }
 0x322   :  { %s1358_s29 = sshll.u32 %s1882_s4, 4  ;;  %s1359_s29 = int_to_ptr.vmem [resolvable:$true] %s1358_s29 }
 0x323   :  { %s1840_s30 = scalar_lea.vmem %s1359_s29, 32  ;;  %s1844_s8 = scalar_lea.vmem %s1359_s29, 256 }
 0x324   :  { %p1841_p6 = scmp.ne.s32.totalorder %s1359_s29, %s1840_s30  ;;  %p1845_p7 = scmp.lt.s32.totalorder %s1359_s29, %s1359_s29 }
 0x325   :  { %p1846_p8 = scmp.lt.s32.totalorder %s1844_s8, %s1840_s30 }
 0x327   :  { %p1847_p9 = por %p1846_p8, %p1845_p7 }
 0x329   :  { %p1848_p10 = pnand %p1847_p9, %p1841_p6 }
 0x32b   :  { %1851 = shalt.err (!%p1848_p10)
}
 0x32c   :  { %s1883_s6 = smov 32   ;;  %s1884_s9 = smov 2  }
 0x32d   :  { %1364 = dma.vmem_to_hbm [thread:$0]  %s1359_s29, 32, %s1989_s7, [#allocation4], %s1883_s6, %s1883_s6, %s1884_s9  }
 0x32e   :  { %1866 = dma.done.wait [#allocation4], 256  }
 0x32f   :  { %1867 = vsyncadd [#allocation4], 4294967040 }
 0x330   :  { %1368 = vsyncpa [#allocation3], 1 }
 0x331   :  { %1369 = vsyncpa [#allocation6], 1 }
 0x332   :  { %1370 = vsyncpa [#allocation9], 1 }
 0x333   :  { %1371 = vsyncpa [#allocation4], 1 }

</bundles_post_ra>
